<compile_context>
chip_gen: v7x
topology: tpu7x:2x2x1
jax: 0.10.0
libtpu: 0.0.40
codegen_flags: <defaults>
</compile_context>

<pallas_src>
import numpy as np
import jax
import jax.numpy as jnp
from jax.experimental import pallas as pl
from jax.experimental.pallas import tpu as pltpu

INPUT_SIZE = 17 + 17 + 16 + 17 + 1   # = 68, as implied by the forward pass
OUT_DIM = 300
NEG_PI = -float(np.pi)


def _round_up(n, m):
    return ((n + m - 1) // m) * m


def _rbf(h, b):
    # GaussianRBF: exp(-pi * (h - b)**2); exp goes to the EUP slot.
    d = h - b
    return jnp.exp((d * d) * NEG_PI)


def mlpe_kernel(x_ref,
                w13_ref, b13_ref, rb1_ref,
                w2_ref, b2_ref, rb2_ref,
                w3b_ref, b3_ref, rb3_ref,
                w4_ref, b4_ref,
                out_ref):
    x = x_ref[...]                                                   # (TB, 68) bf16

    # Fused x-consuming matmul: h13[:, :64] = x @ w1 + b1 ; h13[:, 64:] = x @ w3a
    h13 = (jnp.dot(x, w13_ref[...], preferred_element_type=jnp.float32)
           + b13_ref[...])                                           # (TB, 128) f32

    # mlp1: Linear -> RBF -> Linear -> Dropout(identity) -> RBF
    # Note: the lane-64 splits of h13 could force relayouts; per the review
    # they hide under HBM slack today, so they are kept as-is.
    h1 = _rbf(h13[:, :64], rb1_ref[...])                             # (TB, 64) f32
    h2 = (jnp.dot(h1.astype(w2_ref.dtype), w2_ref[...],
                  preferred_element_type=jnp.float32)
          + b2_ref[...])
    h2 = _rbf(h2, rb2_ref[...])                                      # (TB, 128) f32

    # mlp2: Linear(concat([x, h2])) folded into (x @ w3a) + (h2 @ w3b)
    h3 = (h13[:, 64:]
          + jnp.dot(h2.astype(w3b_ref.dtype), w3b_ref[...],
                    preferred_element_type=jnp.float32)
          + b3_ref[...])
    h3 = _rbf(h3, rb3_ref[...])                                      # (TB, 64) f32

    out = (jnp.dot(h3.astype(w4_ref.dtype), w4_ref[...],
                   preferred_element_type=jnp.float32)
           + b4_ref[...])                                            # (TB, 300) f32
    out_ref[...] = out.astype(out_ref.dtype)


def mlpe_pallas(embedded_x, p, *, tb=2048, out_dtype=jnp.bfloat16):
    B = embedded_x.shape[0]
    # bf16 sublane tile is 16 -> keep TB a multiple of 16.
    TB = _round_up(min(tb, _round_up(B, 16)), 16)
    B_pad = _round_up(B, TB)

    # Stream x in bf16, unpadded at 68 lanes (no wrapper lane-pad HBM pass).
    x = embedded_x.astype(jnp.bfloat16)
    if B_pad != B:
        x = jnp.pad(x, ((0, B_pad - B), (0, 0)))

    # Pack weights: fuse w1 / w3a; MXU operands in bf16, biases/RBF centers f32.
    # TODO(synk): pre-pack/cast these once at param-init time instead of per call.
    w13 = jnp.concatenate([p["w1"], p["w3a"]], axis=1).astype(jnp.bfloat16)  # (68,128)
    b13 = jnp.concatenate([p["b1"], jnp.zeros((1, 64), jnp.float32)], axis=1)

    weights = (w13, b13, p["rb1"],
               p["w2"].astype(jnp.bfloat16), p["b2"], p["rb2"],
               p["w3b"].astype(jnp.bfloat16), p["b3"], p["rb3"],
               p["w4"].astype(jnp.bfloat16), p["b4"])

    def const_spec(a):
        # Resident across all grid steps: constant block index.
        # TODO(synk): pipeline_mode=pl.Buffered(1) would drop the dead second
        # buffer for these (~100 KiB); skipped as a minor, unswept micro-opt.
        return pl.BlockSpec(a.shape, lambda i: (0, 0))

    grid = (B_pad // TB,)

    out_isize = jnp.dtype(out_dtype).itemsize
    flops = 2 * B_pad * (INPUT_SIZE * 128 + 64 * 128 + 128 * 64 + 64 * OUT_DIM)
    transcendentals = B_pad * (64 + 128 + 64)
    weight_bytes = sum(int(np.prod(w.shape)) * w.dtype.itemsize for w in weights)
    bytes_accessed = B_pad * (INPUT_SIZE * 2 + OUT_DIM * out_isize) + weight_bytes

    out = pl.pallas_call(
        mlpe_kernel,
        out_shape=jax.ShapeDtypeStruct((B_pad, OUT_DIM), out_dtype),
        grid=grid,
        # TODO(synk): on v7x, sweep pipeline_mode=pl.Buffered(3) on the x/out specs.
        in_specs=[pl.BlockSpec((TB, INPUT_SIZE), lambda i: (i, 0))]
                 + [const_spec(w) for w in weights],
        out_specs=pl.BlockSpec((TB, OUT_DIM), lambda i: (i, 0)),
        compiler_params=pltpu.CompilerParams(
            dimension_semantics=("parallel",),
            vmem_limit_bytes=32 * 1024 * 1024),
        cost_estimate=pl.CostEstimate(
            flops=flops,
            transcendentals=transcendentals,
            bytes_accessed=bytes_accessed),
    )(x, *weights)

    return out[:B]


def init_params(key):
    ks = jax.random.split(key, 16)

    def lin(kw, fan_in, fan_out):
        lim = 1.0 / np.sqrt(fan_in)
        w = jax.random.uniform(kw, (fan_in, fan_out), jnp.float32, -lim, lim)
        b = jnp.zeros((1, fan_out), jnp.float32)
        return w, b

    w1, b1 = lin(ks[0], INPUT_SIZE, 64)
    w2, b2 = lin(ks[1], 64, 128)
    w3, b3 = lin(ks[2], 128 + INPUT_SIZE, 64)
    w4, b4 = lin(ks[3], 64, 300)
    params = {
        "w1": w1, "b1": b1, "rb1": jax.random.normal(ks[4], (1, 64), jnp.float32),
        "w2": w2, "b2": b2, "rb2": jax.random.normal(ks[5], (1, 128), jnp.float32),
        "w3a": w3[:INPUT_SIZE], "w3b": w3[INPUT_SIZE:], "b3": b3,
        "rb3": jax.random.normal(ks[6], (1, 64), jnp.float32),
        "w4": w4, "b4": b4,
        # embedding tables (used in plain-JAX glue, not in the kernel)
        "emb_lat": jax.random.normal(ks[7], (90, 16), jnp.float32),
        "emb_lon": jax.random.normal(ks[8], (360, 16), jnp.float32),
        "emb_sst": jax.random.normal(ks[9], (64, 16), jnp.float32),
        "emb_date": jax.random.normal(ks[10], (8192, 16), jnp.float32),
    }
    return params


def embed_inputs(x, p):
    # Plain-JAX glue reproducing the torch embedding / trunc / frac logic.
    # TODO(synk): embedding gathers kept outside the Pallas kernel (data-dependent gather).
    def trunc_frac(col):
        t = jnp.trunc(col)
        return t.astype(jnp.int32), (col - t)[:, None]

    lat_i, lat_f = trunc_frac(x[:, 0])
    lon_i, lon_f = trunc_frac(x[:, 1])
    date_i = x[:, 2].astype(jnp.int32)
    sst_i, sst_f = trunc_frac(x[:, 3])
    x0 = jnp.concatenate([p["emb_lat"][lat_i], lat_f], axis=1)      # (B, 17)
    x1 = jnp.concatenate([p["emb_lon"][lon_i], lon_f], axis=1)      # (B, 17)
    x2 = p["emb_date"][date_i]                                      # (B, 16)
    x3 = jnp.concatenate([p["emb_sst"][sst_i], sst_f], axis=1)      # (B, 17)
    return jnp.concatenate([x0, x1, x2, x3, x[:, -1:]], axis=1).astype(jnp.float32)


def reference_forward(embedded_x, p):
    # Pure-f32 reference of the MLP part (exact module semantics).
    h1 = _rbf(embedded_x @ p["w1"] + p["b1"], p["rb1"])
    h2 = _rbf(h1 @ p["w2"] + p["b2"], p["rb2"])
    comb = jnp.concatenate([embedded_x, h2], axis=1)
    w3 = jnp.concatenate([p["w3a"], p["w3b"]], axis=0)
    h3 = _rbf(comb @ w3 + p["b3"], p["rb3"])
    return h3 @ p["w4"] + p["b4"]


def reference_forward_bf16(embedded_x, p, out_dtype=jnp.bfloat16):
    # Emulates the kernel's numerics: bf16 MXU operands, f32 accumulation,
    # RBF in f32, bf16 output cast.
    def bf(a):
        return a.astype(jnp.bfloat16).astype(jnp.float32)

    x = bf(embedded_x)
    h1 = _rbf(x @ bf(p["w1"]) + p["b1"], p["rb1"])
    h2 = _rbf(bf(h1) @ bf(p["w2"]) + p["b2"], p["rb2"])
    h3 = _rbf(x @ bf(p["w3a"]) + bf(h2) @ bf(p["w3b"]) + p["b3"], p["rb3"])
    out = bf(h3) @ bf(p["w4"]) + p["b4"]
    return out.astype(out_dtype)


if __name__ == "__main__":
    key = jax.random.PRNGKey(0)
    kp, kx = jax.random.split(key)
    params = init_params(kp)

    B = 8
    k0, k1, k2, k3, k4 = jax.random.split(kx, 5)
    # x columns: [lat in [0,90), lon in [0,360), date id in [0,8192), sst in [0,64), extra scalar]
    x = jnp.stack([
        jax.random.uniform(k0, (B,), jnp.float32, 0.0, 89.0),
        jax.random.uniform(k1, (B,), jnp.float32, 0.0, 359.0),
        jax.random.randint(k2, (B,), 0, 8192).astype(jnp.float32),
        jax.random.uniform(k3, (B,), jnp.float32, 0.0, 63.0),
        jax.random.normal(k4, (B,), jnp.float32),
    ], axis=1)                                                       # (B, 5)

    embedded_x = embed_inputs(x, params)                             # (B, 68)
    out = mlpe_pallas(embedded_x, params)                            # (B, 300) bf16
    out = jax.block_until_ready(out)
    out_f32 = np.asarray(out.astype(jnp.float32))

    # Tight check against a reference that emulates the kernel's bf16/f32 mix.
    ref_bf16 = np.asarray(
        reference_forward_bf16(embedded_x, params).astype(jnp.float32))
    np.testing.assert_allclose(out_f32, ref_bf16, rtol=1e-2, atol=1e-2)

    # Loose sanity check against the pure-f32 module semantics (bf16 MXU
    # operands give ~1e-2-level absolute deviation).
    ref_f32 = np.asarray(reference_forward(embedded_x, params))
    np.testing.assert_allclose(out_f32, ref_f32, rtol=0.25, atol=0.25)

    print("KERNEL_OK")
</pallas_src>

<mosaic_0001>
module attributes {stable_mosaic.version = 11 : i64} {
  func.func @mlpe_kernel(%arg0: i32, %arg1: memref<16x68xbf16, #tpu.memory_space<vmem>>, %arg2: memref<68x128xbf16, #tpu.memory_space<vmem>>, %arg3: memref<1x128xf32, #tpu.memory_space<vmem>>, %arg4: memref<1x64xf32, #tpu.memory_space<vmem>>, %arg5: memref<64x128xbf16, #tpu.memory_space<vmem>>, %arg6: memref<1x128xf32, #tpu.memory_space<vmem>>, %arg7: memref<1x128xf32, #tpu.memory_space<vmem>>, %arg8: memref<128x64xbf16, #tpu.memory_space<vmem>>, %arg9: memref<1x64xf32, #tpu.memory_space<vmem>>, %arg10: memref<1x64xf32, #tpu.memory_space<vmem>>, %arg11: memref<64x300xbf16, #tpu.memory_space<vmem>>, %arg12: memref<1x300xf32, #tpu.memory_space<vmem>>, %arg13: memref<16x300xbf16, #tpu.memory_space<vmem>>) attributes {dimension_semantics = [#tpu.dimension_semantics<parallel>], iteration_bounds = array<i64: 1>, scalar_prefetch = 0 : i64, scratch_operands = 0 : i64, tpu.core_type = #tpu.core_type<tc>, window_params = [{transform_indices = @transform_0, window_bounds = array<i64: 16, 68>}, {pipeline_mode = #tpu.pipeline_mode<synchronous>, transform_indices = @transform_1, window_bounds = array<i64: 68, 128>}, {pipeline_mode = #tpu.pipeline_mode<synchronous>, transform_indices = @transform_2, window_bounds = array<i64: 1, 128>}, {pipeline_mode = #tpu.pipeline_mode<synchronous>, transform_indices = @transform_3, window_bounds = array<i64: 1, 64>}, {pipeline_mode = #tpu.pipeline_mode<synchronous>, transform_indices = @transform_4, window_bounds = array<i64: 64, 128>}, {pipeline_mode = #tpu.pipeline_mode<synchronous>, transform_indices = @transform_5, window_bounds = array<i64: 1, 128>}, {pipeline_mode = #tpu.pipeline_mode<synchronous>, transform_indices = @transform_6, window_bounds = array<i64: 1, 128>}, {pipeline_mode = #tpu.pipeline_mode<synchronous>, transform_indices = @transform_7, window_bounds = array<i64: 128, 64>}, {pipeline_mode = #tpu.pipeline_mode<synchronous>, transform_indices = @transform_8, window_bounds = array<i64: 1, 64>}, {pipeline_mode = #tpu.pipeline_mode<synchronous>, transform_indices = @transform_9, window_bounds = array<i64: 1, 64>}, {pipeline_mode = #tpu.pipeline_mode<synchronous>, transform_indices = @transform_10, window_bounds = array<i64: 64, 300>}, {pipeline_mode = #tpu.pipeline_mode<synchronous>, transform_indices = @transform_11, window_bounds = array<i64: 1, 300>}, {transform_indices = @transform_12, window_bounds = array<i64: 16, 300>}]} {
    %c0 = arith.constant 0 : index
    %c0_0 = arith.constant 0 : index
    %0 = vector.load %arg1[%c0, %c0_0] : memref<16x68xbf16, #tpu.memory_space<vmem>>, vector<16x68xbf16>
    %c0_1 = arith.constant 0 : index
    %c0_2 = arith.constant 0 : index
    %1 = vector.load %arg2[%c0_1, %c0_2] : memref<68x128xbf16, #tpu.memory_space<vmem>>, vector<68x128xbf16>
    %cst = arith.constant dense<0.000000e+00> : vector<16x128xf32>
    %2 = tpu.matmul %0, %1, %cst {dimension_numbers = #tpu.dot_dimension_numbers<[1], [0], [0], [1], [0, 0, 1, 1], [], []>} : vector<16x68xbf16>, vector<68x128xbf16>, vector<16x128xf32> -> vector<16x128xf32>
    %c0_3 = arith.constant 0 : index
    %c0_4 = arith.constant 0 : index
    %3 = vector.load %arg3[%c0_3, %c0_4] : memref<1x128xf32, #tpu.memory_space<vmem>>, vector<1x128xf32>
    %4 = vector.broadcast %3 : vector<1x128xf32> to vector<16x128xf32>
    %5 = arith.addf %2, %4 : vector<16x128xf32>
    %6 = vector.extract_strided_slice %5 {offsets = [0, 0], sizes = [16, 64], strides = [1, 1]} : vector<16x128xf32> to vector<16x64xf32>
    %c0_5 = arith.constant 0 : index
    %c0_6 = arith.constant 0 : index
    %7 = vector.load %arg4[%c0_5, %c0_6] : memref<1x64xf32, #tpu.memory_space<vmem>>, vector<1x64xf32>
    %8 = vector.broadcast %7 : vector<1x64xf32> to vector<16x64xf32>
    %9 = arith.subf %6, %8 : vector<16x64xf32>
    %10 = arith.mulf %9, %9 : vector<16x64xf32>
    %cst_7 = arith.constant -3.14159274 : f32
    %11 = vector.broadcast %cst_7 : f32 to vector<16x64xf32>
    %12 = arith.mulf %10, %11 : vector<16x64xf32>
    %13 = math.exp %12 : vector<16x64xf32>
    %14 = arith.truncf %13 : vector<16x64xf32> to vector<16x64xbf16>
    %c0_8 = arith.constant 0 : index
    %c0_9 = arith.constant 0 : index
    %15 = vector.load %arg5[%c0_8, %c0_9] : memref<64x128xbf16, #tpu.memory_space<vmem>>, vector<64x128xbf16>
    %cst_10 = arith.constant dense<0.000000e+00> : vector<16x128xf32>
    %16 = tpu.matmul %14, %15, %cst_10 {dimension_numbers = #tpu.dot_dimension_numbers<[1], [0], [0], [1], [0, 0, 1, 1], [], []>} : vector<16x64xbf16>, vector<64x128xbf16>, vector<16x128xf32> -> vector<16x128xf32>
    %c0_11 = arith.constant 0 : index
    %c0_12 = arith.constant 0 : index
    %17 = vector.load %arg6[%c0_11, %c0_12] : memref<1x128xf32, #tpu.memory_space<vmem>>, vector<1x128xf32>
    %18 = vector.broadcast %17 : vector<1x128xf32> to vector<16x128xf32>
    %19 = arith.addf %16, %18 : vector<16x128xf32>
    %c0_13 = arith.constant 0 : index
    %c0_14 = arith.constant 0 : index
    %20 = vector.load %arg7[%c0_13, %c0_14] : memref<1x128xf32, #tpu.memory_space<vmem>>, vector<1x128xf32>
    %21 = vector.broadcast %20 : vector<1x128xf32> to vector<16x128xf32>
    %22 = arith.subf %19, %21 : vector<16x128xf32>
    %23 = arith.mulf %22, %22 : vector<16x128xf32>
    %cst_15 = arith.constant -3.14159274 : f32
    %24 = vector.broadcast %cst_15 : f32 to vector<16x128xf32>
    %25 = arith.mulf %23, %24 : vector<16x128xf32>
    %26 = math.exp %25 : vector<16x128xf32>
    %27 = vector.extract_strided_slice %5 {offsets = [0, 64], sizes = [16, 64], strides = [1, 1]} : vector<16x128xf32> to vector<16x64xf32>
    %28 = arith.truncf %26 : vector<16x128xf32> to vector<16x128xbf16>
    %c0_16 = arith.constant 0 : index
    %c0_17 = arith.constant 0 : index
    %29 = vector.load %arg8[%c0_16, %c0_17] : memref<128x64xbf16, #tpu.memory_space<vmem>>, vector<128x64xbf16>
    %cst_18 = arith.constant dense<0.000000e+00> : vector<16x64xf32>
    %30 = tpu.matmul %28, %29, %cst_18 {dimension_numbers = #tpu.dot_dimension_numbers<[1], [0], [0], [1], [0, 0, 1, 1], [], []>} : vector<16x128xbf16>, vector<128x64xbf16>, vector<16x64xf32> -> vector<16x64xf32>
    %31 = arith.addf %27, %30 : vector<16x64xf32>
    %c0_19 = arith.constant 0 : index
    %c0_20 = arith.constant 0 : index
    %32 = vector.load %arg9[%c0_19, %c0_20] : memref<1x64xf32, #tpu.memory_space<vmem>>, vector<1x64xf32>
    %33 = vector.broadcast %32 : vector<1x64xf32> to vector<16x64xf32>
    %34 = arith.addf %31, %33 : vector<16x64xf32>
    %c0_21 = arith.constant 0 : index
    %c0_22 = arith.constant 0 : index
    %35 = vector.load %arg10[%c0_21, %c0_22] : memref<1x64xf32, #tpu.memory_space<vmem>>, vector<1x64xf32>
    %36 = vector.broadcast %35 : vector<1x64xf32> to vector<16x64xf32>
    %37 = arith.subf %34, %36 : vector<16x64xf32>
    %38 = arith.mulf %37, %37 : vector<16x64xf32>
    %cst_23 = arith.constant -3.14159274 : f32
    %39 = vector.broadcast %cst_23 : f32 to vector<16x64xf32>
    %40 = arith.mulf %38, %39 : vector<16x64xf32>
    %41 = math.exp %40 : vector<16x64xf32>
    %42 = arith.truncf %41 : vector<16x64xf32> to vector<16x64xbf16>
    %c0_24 = arith.constant 0 : index
    %c0_25 = arith.constant 0 : index
    %43 = vector.load %arg11[%c0_24, %c0_25] : memref<64x300xbf16, #tpu.memory_space<vmem>>, vector<64x300xbf16>
    %cst_26 = arith.constant dense<0.000000e+00> : vector<16x300xf32>
    %44 = tpu.matmul %42, %43, %cst_26 {dimension_numbers = #tpu.dot_dimension_numbers<[1], [0], [0], [1], [0, 0, 1, 1], [], []>} : vector<16x64xbf16>, vector<64x300xbf16>, vector<16x300xf32> -> vector<16x300xf32>
    %c0_27 = arith.constant 0 : index
    %c0_28 = arith.constant 0 : index
    %45 = vector.load %arg12[%c0_27, %c0_28] : memref<1x300xf32, #tpu.memory_space<vmem>>, vector<1x300xf32>
    %46 = vector.broadcast %45 : vector<1x300xf32> to vector<16x300xf32>
    %47 = arith.addf %44, %46 : vector<16x300xf32>
    %48 = arith.truncf %47 : vector<16x300xf32> to vector<16x300xbf16>
    %c0_29 = arith.constant 0 : index
    %c0_30 = arith.constant 0 : index
    %49 = vector.load %arg13[%c0_29, %c0_30] : memref<16x300xbf16, #tpu.memory_space<vmem>>, vector<16x300xbf16>
    tpu.vector_store %arg13[%c0_29, %c0_30], %48 {strides = array<i32>} : memref<16x300xbf16, #tpu.memory_space<vmem>>, vector<16x300xbf16>,
    return
  }
  func.func @transform_0(%arg0: i32) -> (i32, i32) {
    %c0_i32 = arith.constant 0 : i32
    %c0_i32_0 = arith.constant 0 : i32
    return %arg0, %c0_i32 : i32, i32
  }
  func.func @transform_1(%arg0: i32) -> (i32, i32) {
    %c0_i32 = arith.constant 0 : i32
    %c0_i32_0 = arith.constant 0 : i32
    %c0_i32_1 = arith.constant 0 : i32
    return %c0_i32, %c0_i32_0 : i32, i32
  }
  func.func @transform_2(%arg0: i32) -> (i32, i32) {
    %c0_i32 = arith.constant 0 : i32
    %c0_i32_0 = arith.constant 0 : i32
    %c0_i32_1 = arith.constant 0 : i32
    return %c0_i32, %c0_i32_0 : i32, i32
  }
  func.func @transform_3(%arg0: i32) -> (i32, i32) {
    %c0_i32 = arith.constant 0 : i32
    %c0_i32_0 = arith.constant 0 : i32
    %c0_i32_1 = arith.constant 0 : i32
    return %c0_i32, %c0_i32_0 : i32, i32
  }
  func.func @transform_4(%arg0: i32) -> (i32, i32) {
    %c0_i32 = arith.constant 0 : i32
    %c0_i32_0 = arith.constant 0 : i32
    %c0_i32_1 = arith.constant 0 : i32
    return %c0_i32, %c0_i32_0 : i32, i32
  }
  func.func @transform_5(%arg0: i32) -> (i32, i32) {
    %c0_i32 = arith.constant 0 : i32
    %c0_i32_0 = arith.constant 0 : i32
    %c0_i32_1 = arith.constant 0 : i32
    return %c0_i32, %c0_i32_0 : i32, i32
  }
  func.func @transform_6(%arg0: i32) -> (i32, i32) {
    %c0_i32 = arith.constant 0 : i32
    %c0_i32_0 = arith.constant 0 : i32
    %c0_i32_1 = arith.constant 0 : i32
    return %c0_i32, %c0_i32_0 : i32, i32
  }
  func.func @transform_7(%arg0: i32) -> (i32, i32) {
    %c0_i32 = arith.constant 0 : i32
    %c0_i32_0 = arith.constant 0 : i32
    %c0_i32_1 = arith.constant 0 : i32
    return %c0_i32, %c0_i32_0 : i32, i32
  }
  func.func @transform_8(%arg0: i32) -> (i32, i32) {
    %c0_i32 = arith.constant 0 : i32
    %c0_i32_0 = arith.constant 0 : i32
    %c0_i32_1 = arith.constant 0 : i32
    return %c0_i32, %c0_i32_0 : i32, i32
  }
  func.func @transform_9(%arg0: i32) -> (i32, i32) {
    %c0_i32 = arith.constant 0 : i32
    %c0_i32_0 = arith.constant 0 : i32
    %c0_i32_1 = arith.constant 0 : i32
    return %c0_i32, %c0_i32_0 : i32, i32
  }
  func.func @transform_10(%arg0: i32) -> (i32, i32) {
    %c0_i32 = arith.constant 0 : i32
    %c0_i32_0 = arith.constant 0 : i32
    %c0_i32_1 = arith.constant 0 : i32
    return %c0_i32, %c0_i32_0 : i32, i32
  }
  func.func @transform_11(%arg0: i32) -> (i32, i32) {
    %c0_i32 = arith.constant 0 : i32
    %c0_i32_0 = arith.constant 0 : i32
    %c0_i32_1 = arith.constant 0 : i32
    return %c0_i32, %c0_i32_0 : i32, i32
  }
  func.func @transform_12(%arg0: i32) -> (i32, i32) {
    %c0_i32 = arith.constant 0 : i32
    %c0_i32_0 = arith.constant 0 : i32
    return %arg0, %c0_i32 : i32, i32
  }
}

</mosaic_0001>

<bundles_post_ra>
// kernel: tpu_custom_call.1
= control target key start
LH: loop header
LB: loop body
LE: loop exit
PB: predicated region body
PF: predicated region fallthrough
CT: control target
= control target key end

     0   :  { %17 = vsyncpa [#allocation3], 0  ;;  %s1416_s0 = inlined_call_operand.hbm [shape: bf16[16,68], index: 0, kind: input, shape index: {}]   ;;  %s1417_s1 = inlined_call_operand.vmem [shape: bf16[68,128], index: 1, kind: input, shape index: {}]   ;;  %s1418_s2 = inlined_call_operand.vmem [shape: f32[1,128], index: 2, kind: input, shape index: {}]   ;;  %s1419_s3 = inlined_call_operand.hbm [shape: f32[1,64], index: 3, kind: input, shape index: {}]   ;;  %s1420_s4 = inlined_call_operand.hbm [shape: bf16[64,128], index: 4, kind: input, shape index: {}]   ;;  %s1421_s5 = inlined_call_operand.hbm [shape: f32[1,128], index: 5, kind: input, shape index: {}]   ;;  %s1422_s6 = inlined_call_operand.hbm [shape: f32[1,128], index: 6, kind: input, shape index: {}]   ;;  %s1423_s7 = inlined_call_operand.vmem [shape: bf16[128,64], index: 7, kind: input, shape index: {}]   ;;  %s1424_s8 = inlined_call_operand.hbm [shape: f32[1,64], index: 8, kind: input, shape index: {}]   ;;  %s1425_s9 = inlined_call_operand.hbm [shape: f32[1,64], index: 9, kind: input, shape index: {}]   ;;  %s1426_s10 = inlined_call_operand.vmem [shape: bf16[64,300], index: 10, kind: input, shape index: {}]   ;;  %s1427_s11 = inlined_call_operand.vmem [shape: f32[1,300], index: 11, kind: input, shape index: {}]   ;;  %s1428_s12 = inlined_call_operand.hbm [shape: bf16[16,300], index: 12, kind: output, shape index: {}]  }
   0x1   :  { %18 = vsyncpa [#allocation6], 0 }
   0x2   :  { %19 = vsyncpa [#allocation9], 0 }
   0x3   :  { %20 = vsyncpa [#allocation12], 0 }
   0x4   :  { %21 = vsyncpa [#allocation4], 0  ;;  %s1103_s21 = smov [#allocation5]   ;;  %s1104_s23 = smov [#allocation8]  }
   0x5   :  { %s44_s22 = sshll.u32 %s1103_s21, 4  ;;  %s66_s24 = sshll.u32 %s1104_s23, 4  ;;  %s45_s22 = int_to_ptr.vmem [resolvable:$true] %s44_s22  ;;  %s67_s24 = int_to_ptr.vmem [resolvable:$true] %s66_s24 }
   0x6   :  { %s917_s27 = scalar_lea.hbm %s1419_s3, 16 }
   0x7   :  { %p918_p0 = scmp.ne.s32.totalorder %s1419_s3, %s917_s27  ;;  %p921_p1 = scmp.lt.u32.totalorder %s917_s27, %s1419_s3 }
   0x9   :  { %p923_p2 = pnand %p921_p1, %p918_p0 }
   0xb   :  { %926 = shalt.err (!%p923_p2)
}
   0xc   :  { %s927_s14 = scalar_lea.vmem %s45_s22, 16  ;;  %s931_s15 = scalar_lea.vmem %s45_s22, 32 }
   0xd   :  { %p928_p3 = scmp.ne.s32.totalorder %s45_s22, %s927_s14  ;;  %p932_p4 = scmp.lt.s32.totalorder %s45_s22, %s45_s22 }
   0xe   :  { %p933_p5 = scmp.lt.s32.totalorder %s931_s15, %s927_s14 }
  0x10   :  { %p934_p6 = por %p933_p5, %p932_p4 }
  0x12   :  { %p935_p7 = pnand %p934_p6, %p928_p3 }
  0x14   :  { %938 = shalt.err (!%p935_p7)
}
  0x15   :  { %47 = dma.hbm_to_vmem [thread:$0]  %s1419_s3, 16, %s45_s22, [#allocation6]  }
  0x16   :  { %s939_s20 = scalar_lea.hbm %s1421_s5, 16 }
  0x17   :  { %p940_p8 = scmp.ne.s32.totalorder %s1421_s5, %s939_s20  ;;  %p943_p9 = scmp.lt.u32.totalorder %s939_s20, %s1421_s5 }
  0x19   :  { %p945_p10 = pnand %p943_p9, %p940_p8 }
  0x1b   :  { %948 = shalt.err (!%p945_p10)
}
  0x1c   :  { %s949_s27 = scalar_lea.vmem %s67_s24, 16  ;;  %s953_s28 = scalar_lea.vmem %s67_s24, 32 }
  0x1d   :  { %p950_p11 = scmp.ne.s32.totalorder %s67_s24, %s949_s27  ;;  %p954_p12 = scmp.lt.s32.totalorder %s67_s24, %s67_s24 }
  0x1e   :  { %p955_p13 = scmp.lt.s32.totalorder %s953_s28, %s949_s27 }
  0x20   :  { %p956_p0 = por %p955_p13, %p954_p12 }
  0x22   :  { %p957_p1 = pnand %p956_p0, %p950_p11 }
  0x24   :  { %960 = shalt.err (!%p957_p1)
}
  0x25   :  { %69 = dma.hbm_to_vmem [thread:$0]  %s1421_s5, 16, %s67_s24, [#allocation9]  }
  0x26   :  { %s1105_s29 = smov [#allocation11]   ;;  %s1106_s13 = smov [#allocation2]  }
  0x27   :  { %s88_s30 = sshll.u32 %s1105_s29, 4  ;;  %s27_s14 = sshll.u32 %s1106_s13, 4  ;;  %s89_s30 = int_to_ptr.vmem [resolvable:$true] %s88_s30  ;;  %s1207_s14 = int_to_ptr.vmem [resolvable:$true] %s27_s14 }
  0x28   :  { %s961_s17 = scalar_lea.hbm %s1424_s8, 16 }
  0x29   :  { %p962_p2 = scmp.ne.s32.totalorder %s1424_s8, %s961_s17  ;;  %p965_p3 = scmp.lt.u32.totalorder %s961_s17, %s1424_s8 }
  0x2b   :  { %p967_p4 = pnand %p965_p3, %p962_p2 }
  0x2d   :  { %970 = shalt.err (!%p967_p4)
}
  0x2e   :  { %s971_s5 = scalar_lea.vmem %s89_s30, 16  ;;  %s975_s24 = scalar_lea.vmem %s89_s30, 32 }
  0x2f   :  { %p972_p5 = scmp.ne.s32.totalorder %s89_s30, %s971_s5  ;;  %p976_p6 = scmp.lt.s32.totalorder %s89_s30, %s89_s30 }
  0x30   :  { %p977_p7 = scmp.lt.s32.totalorder %s975_s24, %s971_s5 }
  0x32   :  { %p978_p8 = por %p977_p7, %p976_p6 }
  0x34   :  { %p979_p9 = pnand %p978_p8, %p972_p5 }
  0x36   :  { %982 = shalt.err (!%p979_p9)
}
  0x37   :  { %91 = dma.hbm_to_vmem [thread:$0]  %s1424_s8, 16, %s89_s30, [#allocation12]  }
  0x38   :  { %s983_s28 = scalar_lea.hbm %s1416_s0, 128 }
  0x39   :  { %p984_p10 = scmp.ne.s32.totalorder %s1416_s0, %s983_s28  ;;  %p987_p11 = scmp.lt.u32.totalorder %s983_s28, %s1416_s0 }
  0x3b   :  { %p989_p12 = pnand %p987_p11, %p984_p10 }
  0x3d   :  { %992 = shalt.err (!%p989_p12)
}
  0x3e   :  { %s993_s15 = scalar_lea.vmem %s1207_s14, 128  ;;  %p998_p0 = scmp.lt.s32.totalorder %s1207_s14, %s1207_s14 }
  0x3f   :  { %p994_p13 = scmp.ne.s32.totalorder %s1207_s14, %s993_s15  ;;  %p999_p1 = scmp.lt.s32.totalorder %s993_s15, %s993_s15 }
  0x41   :  { %p1000_p2 = por %p999_p1, %p998_p0 }
  0x43   :  { %p1001_p3 = pnand %p1000_p2, %p994_p13 }
  0x45   :  { %1004 = shalt.err (!%p1001_p3)
}
  0x46   :  { %s1107_s8 = smov 64   ;;  %s1108_s30 = smov 4  }
  0x47   :  { %33 = dma.hbm_to_vmem [thread:$0]  %s1416_s0, 128, %s1207_s14, [#allocation3], %s1107_s8, %s1107_s8, %s1108_s30  }
  0x48   :  { %s1109_s18 = smov [#allocation7]   ;;  %s1110_s20 = smov [#allocation10]  }
  0x49   :  { %s53_s19 = sshll.u32 %s1109_s18, 4  ;;  %s76_s21 = sshll.u32 %s1110_s20, 4  ;;  %s54_s19 = int_to_ptr.vmem [resolvable:$true] %s53_s19  ;;  %s77_s21 = int_to_ptr.vmem [resolvable:$true] %s76_s21 }
  0x4a   :  { %s1005_s23 = scalar_lea.hbm %s1420_s4, 512 }
  0x4b   :  { %p1006_p4 = scmp.ne.s32.totalorder %s1420_s4, %s1005_s23  ;;  %p1009_p5 = scmp.lt.u32.totalorder %s1005_s23, %s1420_s4 }
  0x4d   :  { %p1011_p6 = pnand %p1009_p5, %p1006_p4 }
  0x4f   :  { %1014 = shalt.err (!%p1011_p6)
}
  0x50   :  { %s1015_s0 = scalar_lea.vmem %s54_s19, 512  ;;  %p1020_p8 = scmp.lt.s32.totalorder %s54_s19, %s54_s19 }
  0x51   :  { %p1016_p7 = scmp.ne.s32.totalorder %s54_s19, %s1015_s0  ;;  %p1021_p9 = scmp.lt.s32.totalorder %s1015_s0, %s1015_s0 }
  0x53   :  { %p1022_p10 = por %p1021_p9, %p1020_p8 }
  0x55   :  { %p1023_p11 = pnand %p1022_p10, %p1016_p7 }
  0x57   :  { %1026 = shalt.err (!%p1023_p11)
}
  0x58   :  { %59 = dma.hbm_to_vmem [thread:$0]  %s1420_s4, 512, %s54_s19, [#allocation6], %s1107_s8, %s1107_s8, %s1108_s30  }
  0x59   :  { %s1027_s13 = scalar_lea.hbm %s1422_s6, 16 }
  0x5a   :  { %p1028_p12 = scmp.ne.s32.totalorder %s1422_s6, %s1027_s13  ;;  %p1031_p13 = scmp.lt.u32.totalorder %s1027_s13, %s1422_s6 }
  0x5c   :  { %p1033_p0 = pnand %p1031_p13, %p1028_p12 }
  0x5e   :  { %1036 = shalt.err (!%p1033_p0)
}
  0x5f   :  { %s1037_s20 = scalar_lea.vmem %s77_s21, 16  ;;  %s1041_s5 = scalar_lea.vmem %s77_s21, 32 }
  0x60   :  { %p1038_p1 = scmp.ne.s32.totalorder %s77_s21, %s1037_s20  ;;  %p1042_p2 = scmp.lt.s32.totalorder %s77_s21, %s77_s21 }
  0x61   :  { %p1043_p3 = scmp.lt.s32.totalorder %s1041_s5, %s1037_s20 }
  0x63   :  { %p1044_p4 = por %p1043_p3, %p1042_p2 }
  0x65   :  { %p1045_p5 = pnand %p1044_p4, %p1038_p1 }
  0x67   :  { %1048 = shalt.err (!%p1045_p5)
}
  0x68   :  { %79 = dma.hbm_to_vmem [thread:$0]  %s1422_s6, 16, %s77_s21, [#allocation9]  }
  0x69   :  { %s1111_s19 = smov [#allocation13]   ;;  %s1049_s26 = scalar_lea.hbm %s1425_s9, 16 }
  0x6a   :  { %s98_s24 = sshll.u32 %s1111_s19, 4  ;;  %p1050_p6 = scmp.ne.s32.totalorder %s1425_s9, %s1049_s26  ;;  %s99_s24 = int_to_ptr.vmem [resolvable:$true] %s98_s24 }
  0x6b   :  { %p1053_p7 = scmp.lt.u32.totalorder %s1049_s26, %s1425_s9 }
  0x6d   :  { %p1055_p8 = pnand %p1053_p7, %p1050_p6 }
  0x6f   :  { %1058 = shalt.err (!%p1055_p8)
}
  0x70   :  { %s1059_s3 = scalar_lea.vmem %s99_s24, 16  ;;  %s1063_s6 = scalar_lea.vmem %s99_s24, 32 }
  0x71   :  { %p1060_p9 = scmp.ne.s32.totalorder %s99_s24, %s1059_s3  ;;  %p1064_p10 = scmp.lt.s32.totalorder %s99_s24, %s99_s24 }
  0x72   :  { %p1065_p11 = scmp.lt.s32.totalorder %s1063_s6, %s1059_s3 }
  0x74   :  { %p1066_p12 = por %p1065_p11, %p1064_p10 }
  0x76   :  { %p1067_p13 = pnand %p1066_p12, %p1060_p9 }
  0x78   :  { %1070 = shalt.err (!%p1067_p13)
}
  0x79   :  { %101 = dma.hbm_to_vmem [thread:$0]  %s1425_s9, 16, %s99_s24, [#allocation12]  }
  0x7a   :  { %1093 = dma.done.wait [#allocation3], 128  }
  0x7b   :  { %1094 = vsyncadd [#allocation3], 4294967168 }
  0x7c   :  { %1095 = dma.done.wait [#allocation6], 528  }
  0x7d   :  { %1096 = vsyncadd [#allocation6], 4294966768 }
  0x7e   :  { %1097 = dma.done.wait [#allocation9], 32  }
  0x7f   :  { %1098 = vsyncadd [#allocation9], 4294967264 }
  0x80   :  { %1099 = dma.done.wait [#allocation12], 32  }
  0x81   :  { %1100 = vsyncadd [#allocation12], 4294967264  ;;  %v1112_v0 = vmov 0.0   ;;  %vm1113_vm0 = vmmov 0   ;;  %v871_v1 = vld [vmem:[%s1417_s1] sm:$0xff]   ;;  %v872_v2 = vld [vmem:[%s1417_s1 + $0x8] sm:$0xff]  }
  0x82   :  { %798 = vmatprep.subr.bf16.mxu0 %v1112_v0  ;;  %808 = vmatprep.mubr.msk.bf16.mxu0 %vm1113_vm0, %v1112_v0  ;;  %v873_v3 = vld [vmem:[%s1417_s1 + $0x10] sm:$0xff]   ;;  %vm182_vm1 = vcmask 1041408   ;;  %v874_v4 = vld [vmem:[%s1417_s1 + $0x18] sm:$0xff]   ;;  %v875_v5 = vld [vmem:[%s1417_s1 + $0x20] ss:$0 sps:$4 sm:$0x33]  }
  0x83   :  { %812 = vmatprep.subr.bf16.mxu1 %v1112_v0  ;;  %820 = vmatprep.mubr.msk.bf16.mxu1 %vm1113_vm0, %v1112_v0  ;;  %v184_v6 = vsel %vm182_vm1, %v875_v5, 0  ;;  %v876_v7 = vld [vmem:[#allocation2] sm:$0xff]   ;;  %vm178_vm2 = vcmask 556032   ;;  %v877_v8 = vld [vmem:[#allocation7] sm:$0xff]   ;;  %v878_v9 = vld [vmem:[#allocation7 + $0x8] sm:$0xff]   ;;  %vm284_vm3 = vcmask 523264  }
  0x84   :  { %799 = vmatpush3.bf16.msra.mxu0 %v871_v1  ;;  %813 = vmatpush3.bf16.msra.mxu1 %v877_v8  ;;  %v879_v10 = vld [vmem:[#allocation7 + $0x10] sm:$0xff]   ;;  %v880_v11 = vld [vmem:[#allocation7 + $0x18] sm:$0xff]   ;;  %v883_v33 = vld [vmem:[%s1423_s7 + $0x10] sm:$0xff]   ;;  %v1114_v5 = vmov 0   ;;  %vm701_vm4 = vcmask 355328  }
  0x85   :  { %800 = vmatprep.subr.bf16.mxu0 %v1112_v0  ;;  %814 = vmatprep.subr.bf16.mxu1 %v1112_v0  ;;  %v725_v12 = vld [vmem:[%s1418_s2] ss:$0 sm:$0xff]  ;;  %v733_v14 = vld [vmem:[#allocation5] ss:$0 sm:$0xff]  ;;  %v884_v34 = vld [vmem:[%s1423_s7 + $0x18] sm:$0xff]  }
  0x86   :  { %v881_v30 = vld [vmem:[%s1423_s7] sm:$0xff]   ;;  %v882_v32 = vld [vmem:[%s1423_s7 + $0x8] sm:$0xff]   ;;  %v887_v37 = vld [vmem:[%s1423_s7 + $0x30] sm:$0xff]  }
  0x87   :  { %v885_v35 = vld [vmem:[%s1423_s7 + $0x20] sm:$0xff]   ;;  %v886_v36 = vld [vmem:[%s1423_s7 + $0x28] sm:$0xff]   ;;  %v888_v38 = vld [vmem:[%s1423_s7 + $0x38] sm:$0xff]  }
  0x88   :  { %801 = vmatpush3.bf16.msra.mxu0 %v872_v2  ;;  %815 = vmatpush3.bf16.msra.mxu1 %v878_v9  ;;  %v734_v39 = vld [vmem:[#allocation8] ss:$0 sm:$0xff]  ;;  %v740_v41 = vld [vmem:[#allocation10] ss:$0 sm:$0xff]  ;;  %v749_v58 = vld [vmem:[#allocation11] ss:$0 sm:$0xff] }
  0x89   :  { %802 = vmatprep.subr.bf16.mxu0 %v1112_v0  ;;  %816 = vmatprep.subr.bf16.mxu1 %v1112_v0  ;;  %v750_v59 = vld [vmem:[#allocation13] ss:$0 sm:$0xff]  ;;  %v889_v1 = vld [vmem:[%s1426_s10] ss:$12 sps:$4 sm:$0xff]   ;;  %v898_v9 = vld [vmem:[%s1426_s10 + $0x48] ss:$12 sps:$4 sm:$0xff]  }
  0x8a   :  { %468 = vrot.lane.b32.xlu1 %v749_v58, %s1107_s8  ;;  %v891_v2 = vld [vmem:[%s1426_s10 + $0x4] ss:$12 sps:$4 sm:$0xff]   ;;  %v900_v8 = vld [vmem:[%s1426_s10 + $0x4c] ss:$12 sps:$4 sm:$0xff]  }
  0x8c   :  { %803 = vmatpush3.bf16.msra.mxu0 %v873_v3  ;;  %817 = vmatpush3.bf16.msra.mxu1 %v879_v10  ;;  %v894_v3 = vld [vmem:[%s1426_s10 + $0x1c] ss:$12 sps:$4 sm:$0xff]  }
  0x8d   :  { %804 = vmatprep.subr.bf16.mxu0 %v1112_v0  ;;  %818 = vmatprep.subr.bf16.mxu1 %v1112_v0 }
  0x8e   :  { %479 = vrot.lane.b32.xlu1 %v750_v59, %s1107_s8 }
  0x90   :  { %805 = vmatpush3.bf16.msra.mxu0 %v874_v4  ;;  %819 = vmatpush3.bf16.msra.mxu1 %v880_v11  ;;  %v892_v4 = vld [vmem:[%s1426_s10 + $0x18] ss:$12 sps:$4 sm:$0xff]  }
  0x91   :  { %806 = vmatprep.subr.bf16.mxu0 %v1112_v0  ;;  %824 = vmatprep.subr.bf16.mxu1 %v1112_v0 }
  0x94   :  { %807 = vmatpush3.bf16.msra.mxu0 %v184_v6  ;;  %v897_v6 = vld [vmem:[%s1426_s10 + $0x34] ss:$12 sps:$4 sm:$0xff]  }
  0x95   :  { %596 = vmatprep.subr.bf16.mxu0 %v891_v2 }
  0x97   :  { %809 = vmatmul.mubr.msk.bf16.vlgmr.msra.gmra.mrb[0].mxu0 %vm178_vm2, %v876_v7  ;;  %v895_v7 = vld [vmem:[%s1426_s10 + $0x30] ss:$12 sps:$4 sm:$0xff]  }
  0x98   :  { %597 = vmatpush1.bf16.msra.mxu0 %v889_v1  ;;  %628 = vmatprep.mubr.bf16.mxu0 %v1114_v5 }
  0x99   :  { %598 = vmatprep.subr.bf16.mxu0 %v894_v3 }
  0x9c   :  { %599 = vmatpush1.bf16.msra.mxu0 %v892_v4 }
  0x9d   :  { %600 = vmatprep.subr.bf16.mxu0 %v897_v6 }
  0xa0   :  { %601 = vmatpush1.bf16.msra.mxu0 %v895_v7 }
  0xa1   :  { %602 = vmatprep.subr.bf16.mxu0 %v900_v8 }
  0xa4   :  { %603 = vmatpush1.bf16.msra.mxu0 %v898_v9 }
  0xa5   :  { %844 = vmatprep.subr.bf16.mxu0 %v1112_v0 }
  0xfc   :  { %v469_v10 = vpop.permute.xlu1 %468 }
 0x16a   :  { %v220_v13 = vpop.f32.mrb[0].mxu0 }
 0x16b   :  { %v1310_v15 = vadd.f32 %v725_v12, %v220_v13  ;;  %v810_v16 = vpop.f32.mrb[1].mxu0  ;;  %v480_v13 = vpop.permute.xlu1 %479 }
 0x16c   :  { %v223_v17 = vpop.f32.mrb[2].mxu0 }
 0x16d   :  { %v234_v18 = vsub.f32 %v1310_v15, %v733_v14  ;;  %v1313_v19 = vadd.f32 %v725_v12, %v223_v17  ;;  %v811_v20 = vpop.f32.mrb[3].mxu0 }
 0x16f   :  { %v236_v21 = vmul.f32 %v234_v18, %v234_v18  ;;  %v235_v22 = vsub.f32 %v1313_v19, %v733_v14 }
 0x171   :  { %v238_v23 = vmul.f32 -3.1415927, %v236_v21  ;;  %v237_v24 = vmul.f32 %v235_v22, %v235_v22 }
 0x173   :  { %v240_v25 = vmul.f32 1.442695, %v238_v23  ;;  %v239_v26 = vmul.f32 -3.1415927, %v237_v24 }
 0x175   :  { %v242_v27 = vmul.f32 1.442695, %v239_v26  ;;  %905 = vpow2.f32 %v240_v25 }
 0x177   :  { %907 = vpow2.f32 %v242_v27 }
 0x17f   :  { %v906_v28 = vpop.eup %905 }
 0x181   :  { %v908_v29 = vpop.eup %907 }
 0x182   :  { %v244_v31 = vpack.c.bf16 %v908_v29, %v906_v28 }
 0x184   :  { %821 = vmatmul.mubr.msk.bf16.vlgmr.msra.gmra.mrb[0].mxu1 %vm284_vm3, %v244_v31  ;;  %v902_v31 = vld [vmem:[%s1426_s10 + $0x20] ss:$12 sps:$4 sm:$0xff]  }
 0x185   :  { %825 = vmatpush3.bf16.msra.mxu1 %v881_v30  ;;  %840 = vmatprep.mubr.msk.bf16.mxu1 %vm1113_vm0, %v1112_v0 }
 0x186   :  { %826 = vmatprep.subr.bf16.mxu1 %v1112_v0 }
 0x189   :  { %827 = vmatpush3.bf16.msra.mxu1 %v882_v32  ;;  %v903_v32 = vld [vmem:[%s1426_s10 + $0x38] ss:$12 sps:$4 sm:$0xff]  }
 0x18a   :  { %828 = vmatprep.subr.bf16.mxu1 %v1112_v0 }
 0x18d   :  { %829 = vmatpush3.bf16.msra.mxu1 %v883_v33  ;;  %v904_v33 = vld [vmem:[%s1426_s10 + $0x50] ss:$12 sps:$4 sm:$0xff]  }
 0x18e   :  { %830 = vmatprep.subr.bf16.mxu1 %v1112_v0 }
 0x191   :  { %831 = vmatpush3.bf16.msra.mxu1 %v884_v34  ;;  %v511_v34 = vlaneseq }
 0x192   :  { %832 = vmatprep.subr.bf16.mxu1 %v1112_v0 }
 0x195   :  { %833 = vmatpush3.bf16.msra.mxu1 %v885_v35  ;;  %v512_v35 = vshrl.u32 %v511_v34, 7 }
 0x196   :  { %834 = vmatprep.subr.bf16.mxu1 %v1112_v0 }
 0x199   :  { %835 = vmatpush3.bf16.msra.mxu1 %v886_v36  ;;  %v513_v36 = vsub.s32 0, %v512_v35 }
 0x19a   :  { %836 = vmatprep.subr.bf16.mxu1 %v1112_v0 }
 0x19d   :  { %837 = vmatpush3.bf16.msra.mxu1 %v887_v37  ;;  %v509_v37 = vld [vmem:[%s1427_s11] sm:$0x7] }
 0x19e   :  { %838 = vmatprep.subr.bf16.mxu1 %v1112_v0 }
 0x1a1   :  { %839 = vmatpush3.bf16.msra.mxu1 %v888_v38  ;;  %v517_v38 = vsub.s32 1, %v512_v35 }
 0x257   :  { %v322_v40 = vpop.f32.mrb[0].mxu1 }
 0x258   :  { %v323_v42 = vadd.f32 %v734_v39, %v322_v40  ;;  %v822_v43 = vpop.f32.mrb[1].mxu1  ;;  %v518_v40 = vrot.slane %v509_v37, %v517_v38 }
 0x259   :  { %v325_v44 = vpop.f32.mrb[2].mxu1 }
 0x25a   :  { %v336_v45 = vsub.f32 %v323_v42, %v740_v41  ;;  %v326_v46 = vadd.f32 %v734_v39, %v325_v44  ;;  %v823_v47 = vpop.f32.mrb[3].mxu1  ;;  %v514_v39 = vrot.slane %v509_v37, %v513_v36 }
 0x25c   :  { %v338_v48 = vmul.f32 %v336_v45, %v336_v45  ;;  %v337_v49 = vsub.f32 %v326_v46, %v740_v41 }
 0x25e   :  { %v340_v50 = vmul.f32 -3.1415927, %v338_v48  ;;  %v339_v51 = vmul.f32 %v337_v49, %v337_v49 }
 0x260   :  { %v342_v52 = vmul.f32 1.442695, %v340_v50  ;;  %v341_v53 = vmul.f32 -3.1415927, %v339_v51  ;;  %v521_v50 = vsub.s32 2, %v512_v35 }
 0x262   :  { %v344_v54 = vmul.f32 1.442695, %v341_v53  ;;  %909 = vpow2.f32 %v342_v52  ;;  %v522_v51 = vrot.slane %v509_v37, %v521_v50 }
 0x264   :  { %911 = vpow2.f32 %v344_v54 }
 0x26c   :  { %v910_v55 = vpop.eup %909 }
 0x26e   :  { %v912_v56 = vpop.eup %911 }
 0x26f   :  { %v346_v57 = vpack.c.bf16 %v912_v56, %v910_v55 }
 0x271   :  { %841 = vmatmul.mubr.bf16.vlgmr.msra.gmra.mrb[4].mxu1 %v346_v57 }
 0x344   :  { %v445_v60 = vpop.f32.mrb[4].mxu1 }
 0x345   :  { %454 = vrot.lane.b32.xlu0 %v445_v60, %s1107_s8  ;;  %v842_v61 = vpop.f32.mrb[5].mxu1 }
 0x346   :  { %v448_v62 = vpop.f32.mrb[6].mxu1 }
 0x347   :  { %v843_v63 = vpop.f32.mrb[7].mxu1 }
 0x349   :  { %456 = vrot.lane.b32.xlu0 %v448_v62, %s1107_s8 }
 0x3b7   :  { %v455_v11 = vpop.permute.xlu0 %454 }
 0x3b8   :  { %v460_v12 = vadd.f32 %v455_v11, %v1310_v15  ;;  %v901_v15 = vld [vmem:[%s1426_s10 + $0x8] ss:$12 sps:$4 sm:$0xff]   ;;  %s1115_s10 = smov [#allocation14]  }
 0x3b9   :  { %s710_s11 = sshll.u32 %s1115_s10, 4  ;;  %s711_s11 = int_to_ptr.vmem [resolvable:$true] %s710_s11 }
 0x3ba   :  { %v471_v14 = vadd.f32 %v469_v10, %v460_v12  ;;  %s1071_s9 = scalar_lea.vmem %s711_s11, 384  ;;  %p1076_p1 = scmp.lt.s32.totalorder %s711_s11, %s711_s11 }
 0x3bb   :  { %v457_v16 = vpop.permute.xlu0 %456  ;;  %p1072_p0 = scmp.ne.s32.totalorder %s711_s11, %s1071_s9  ;;  %p1077_p2 = scmp.lt.s32.totalorder %s1071_s9, %s1071_s9 }
 0x3bc   :  { %v482_v17 = vsub.f32 %v471_v14, %v480_v13  ;;  %v461_v18 = vadd.f32 %v457_v16, %v1313_v19 }
 0x3bd   :  { %p1078_p3 = por %p1077_p2, %p1076_p1 }
 0x3be   :  { %v484_v20 = vmul.f32 %v482_v17, %v482_v17  ;;  %v472_v21 = vadd.f32 %v469_v10, %v461_v18 }
 0x3bf   :  { %p1079_p4 = pnand %p1078_p3, %p1072_p0 }
 0x3c0   :  { %v486_v22 = vmul.f32 -3.1415927, %v484_v20  ;;  %v483_v23 = vsub.f32 %v472_v21, %v480_v13 }
 0x3c2   :  { %v485_v24 = vmul.f32 %v483_v23, %v483_v23  ;;  %v488_v25 = vmul.f32 1.442695, %v486_v22 }
 0x3c4   :  { %v487_v26 = vmul.f32 -3.1415927, %v485_v24  ;;  %913 = vpow2.f32 %v488_v25 }
 0x3c6   :  { %v490_v27 = vmul.f32 1.442695, %v487_v26 }
 0x3c8   :  { %915 = vpow2.f32 %v490_v27 }
 0x3ce   :  { %v914_v28 = vpop.eup %913 }
 0x3d2   :  { %v916_v29 = vpop.eup %915 }
 0x3d3   :  { %v492_v30 = vpack.c.bf16 %v916_v29, %v914_v28 }
 0x3d5   :  { %527 = vrot.lane.b32.xlu0 %v492_v30, %s1107_s8 }
 0x447   :  { %v528_v19 = vpop.permute.xlu0 %527 }
 0x448   :  { %763 = vmatmul.mubr.msk.bf16.vlgmr.msra.gmra.mrb[4].mxu0 %vm284_vm3, %v528_v19 }
 0x449   :  { %845 = vmatpush3.bf16.msra.mxu0 %v901_v15  ;;  %852 = vmatprep.mubr.msk.bf16.mxu0 %vm1113_vm0, %v1112_v0 }
 0x44a   :  { %846 = vmatprep.subr.bf16.mxu0 %v1112_v0 }
 0x44d   :  { %847 = vmatpush3.bf16.msra.mxu0 %v902_v31 }
 0x44e   :  { %848 = vmatprep.subr.bf16.mxu0 %v1112_v0 }
 0x451   :  { %849 = vmatpush3.bf16.msra.mxu0 %v903_v32 }
 0x452   :  { %850 = vmatprep.subr.bf16.mxu0 %v1112_v0 }
 0x455   :  { %851 = vmatpush3.bf16.msra.mxu0 %v904_v33 }
 0x458   :  { %853 = vmatmul.mubr.msk.bf16.vlgmr.msra.gmra.mrb[8].mxu0 %vm284_vm3, %v528_v19 }
 0x51b   :  { %v630_v41 = vpop.f32.mrb[4].mxu0 }
 0x51c   :  { %v631_v42 = vadd.f32 %v630_v41, %v514_v39  ;;  %v632_v43 = vpop.f32.mrb[5].mxu0 }
 0x51d   :  { %v633_v44 = vadd.f32 %v632_v43, %v518_v40  ;;  %v634_v45 = vpop.f32.mrb[6].mxu0 }
 0x51e   :  { %v635_v46 = vadd.f32 %v634_v45, %v514_v39  ;;  %v636_v0 = vpop.f32.mrb[7].mxu0 }
 0x51f   :  { %v769_v47 = vpack.c.bf16 %v633_v44, %v631_v42  ;;  %v637_v48 = vadd.f32 %v636_v0, %v518_v40 }
 0x521   :  { %700 = vst [vmem:[#allocation14] sm:$0xff] %v769_v47  ;;  %v771_v49 = vpack.c.bf16 %v637_v48, %v635_v46 }
 0x523   :  { %703 = vst [vmem:[#allocation14 + $0xc] sm:$0xff] %v771_v49 }
 0x52b   :  { %v673_v52 = vpop.f32.mrb[8].mxu0 }
 0x52c   :  { %v674_v53 = vadd.f32 %v673_v52, %v522_v51  ;;  %v854_v54 = vpop.f32.mrb[9].mxu0 }
 0x52d   :  { %v676_v55 = vpop.f32.mrb[10].mxu0 }
 0x52e   :  { %v770_v56 = vpack.c.bf16 %v674_v53, %v674_v53  ;;  %v677_v57 = vadd.f32 %v676_v55, %v522_v51  ;;  %v855_v58 = vpop.f32.mrb[11].mxu0 }
 0x530   :  { %702 = vst.msk [vmem:[#allocation14 + $0x8] sm:$0xf] %vm701_vm4, %v770_v56  ;;  %v772_v59 = vpack.c.bf16 %v677_v57, %v677_v57 }
 0x532   :  { %704 = vst.msk [vmem:[#allocation14 + $0x14] sm:$0xf] %vm701_vm4, %v772_v59 }
 0x533   :  { %1082 = shalt.err (!%p1079_p4)
}
 0x534   :  { %s1083_s13 = scalar_lea.hbm %s1428_s12, 384 }
 0x535   :  { %p1084_p5 = scmp.ne.s32.totalorder %s1428_s12, %s1083_s13  ;;  %p1087_p6 = scmp.lt.u32.totalorder %s1083_s13, %s1428_s12 }
 0x537   :  { %p1089_p7 = pnand %p1087_p6, %p1084_p5 }
 0x539   :  { %1092 = shalt.err (!%p1089_p7)
}
 0x53a   :  { %s1116_s20 = smov 192   ;;  %s1117_s5 = smov 12  }
 0x53b   :  { %716 = dma.vmem_to_hbm [thread:$0]  %s711_s11, 384, %s1428_s12, [#allocation4], %s1116_s20, %s1116_s20, %s1117_s5  }
 0x53c   :  { %1101 = dma.done.wait [#allocation4], 384  }
 0x53d   :  { %1102 = vsyncadd [#allocation4], 4294966912 }
 0x53e   :  { %720 = vsyncpa [#allocation3], 1 }
 0x53f   :  { %721 = vsyncpa [#allocation6], 1 }
 0x540   :  { %722 = vsyncpa [#allocation9], 1 }
 0x541   :  { %723 = vsyncpa [#allocation12], 1 }
 0x542   :  { %724 = vsyncpa [#allocation4], 1 }

</bundles_post_ra>
